<compile_context>
chip_gen: v5e
topology: v5e:2x2
jax: 0.10.0
libtpu: 0.0.40
codegen_flags: <defaults>
</compile_context>

<pallas_src>
import math
import functools

import jax
import jax.numpy as jnp
from jax import lax
from jax.experimental import pallas as pl
from jax.experimental.pallas import tpu as pltpu


def _hard_attention_kernel(x_ref, pe_ref, w_ref, g_ref, o_ref, *,
                           n_heads, attn_size, tau, hidden, seq, block_b,
                           mm_dtype):
    na = n_heads * attn_size
    bt = block_b

    x = x_ref[...]                                 # (Bt, S, H)  f32
    pos = x + pe_ref[...][None, :, :]              # (Bt, S, H)  f32 VPU add

    # Fused Q|K matmul with the batch block folded into the MXU M dim.
    pos2 = pos.reshape(bt * seq, hidden)           # (Bt*S, H)
    qk = jnp.dot(pos2.astype(mm_dtype), w_ref[...].astype(mm_dtype),
                 preferred_element_type=jnp.float32)        # (Bt*S, 2*N*A)
    qk = qk.reshape(bt, seq, 2 * na)
    q = qk[:, :, :na]                              # (Bt, S, N*A)
    k = qk[:, :, na:]                              # (Bt, S, N*A)

    # Algebraic identity: sum_t <K_t, Q_s> == <sum_t K_t, Q_s>  (linear in S).
    ksum = jnp.sum(k, axis=1, keepdims=True)       # (Bt, 1, N*A)

    # Per-head selection mask (N, N*A): hmask[n, c] = 1 iff column c belongs
    # to head n.  Built with iota + compares (no vector integer division).
    head = lax.broadcasted_iota(jnp.int32, (n_heads, na), 0)
    col = lax.broadcasted_iota(jnp.int32, (n_heads, na), 1)
    lower = head * attn_size
    hmask = ((col >= lower) & (col < lower + attn_size)).astype(jnp.float32)

    kmat = ksum * hmask[None, :, :]                # (Bt, N, N*A)

    scale = 1.0 / (math.sqrt(hidden) * seq)
    # logits[b,n,s] = <sum_t K[b,n,t,:], Q[b,n,s,:]> * scale   -> (Bt, N, S)
    logits = jnp.einsum('bnk,bsk->bns', kmat, q,
                        preferred_element_type=jnp.float32) * scale

    # Hard gumbel-softmax forward pass: one-hot of argmax of (logits+g)/tau,
    # vectorized across all heads (first occurrence wins on exact ties).
    z = (logits + g_ref[...]) / tau                # (Bt, N, S) f32
    iota_s = lax.broadcasted_iota(jnp.int32, (bt, n_heads, seq), 2)
    m = jnp.max(z, axis=-1, keepdims=True)
    idx = jnp.min(jnp.where(z >= m, iota_s, seq), axis=-1, keepdims=True)
    onehot = (iota_s == idx).astype(jnp.float32)   # (Bt, N, S)

    # Single stacked row-select matmul across all heads.  x stays f32 so the
    # selected rows are returned exactly.
    out = jnp.einsum('bns,bsh->bnh', onehot, x,
                     preferred_element_type=jnp.float32)     # (Bt, N, H)

    # Lane-dense output block (last dim N*H); per-head static lane-slice store.
    for n in range(n_heads):
        o_ref[:, :, n * hidden:(n + 1) * hidden] = out[:, n:n + 1, :]


def _pick_block_b(batch, seq):
    """Largest divisor of `batch` with block_b*seq <= ~256, keeping >=2 grid
    steps when batch >= 2 (so the parallel axis can use both v7x cores)."""
    target = max(1, 256 // max(seq, 1))
    bt = 1
    for d in range(1, batch + 1):
        if batch % d == 0 and d <= target:
            bt = d
    if batch >= 2 and batch // bt < 2:
        cap = min(target, batch // 2)
        bt = 1
        for d in range(1, batch // 2 + 1):
            if batch % d == 0 and d <= cap:
                bt = d
    return bt


def hard_attention_layer(x, pe, wq, wk, gumbel, *, n_heads, attn_size, tau,
                         block_b=None, matmul_dtype=jnp.float32):
    B, S, H = x.shape
    na = n_heads * attn_size
    assert pe.shape == (S, H)
    assert wq.shape == (H, na)
    assert wk.shape == (H, na)
    assert gumbel.shape == (B, n_heads, S)

    bt = block_b if block_b is not None else _pick_block_b(B, S)
    assert B % bt == 0, f"block_b={bt} must divide batch={B}"

    # Fuse Wq and Wk into a single (H, 2*N*A) operand -> one MXU matmul.
    w = jnp.concatenate([wq, wk], axis=1)

    kernel = functools.partial(
        _hard_attention_kernel,
        n_heads=n_heads, attn_size=attn_size, tau=tau, hidden=H, seq=S,
        block_b=bt, mm_dtype=matmul_dtype)

    out_flat = pl.pallas_call(
        kernel,
        out_shape=jax.ShapeDtypeStruct((B, 1, n_heads * H), jnp.float32),
        grid=(B // bt,),
        in_specs=[
            pl.BlockSpec((bt, S, H), lambda b: (b, 0, 0)),        # x
            pl.BlockSpec((S, H), lambda b: (0, 0)),               # pe
            pl.BlockSpec((H, 2 * na), lambda b: (0, 0)),          # [Wq|Wk]^T
            pl.BlockSpec((bt, n_heads, S), lambda b: (b, 0, 0)),  # gumbel
        ],
        out_specs=pl.BlockSpec((bt, 1, n_heads * H), lambda b: (b, 0, 0)),
        compiler_params=pltpu.CompilerParams(
            dimension_semantics=("parallel",)),
    )(x, pe, w, gumbel)

    return out_flat.reshape(B, n_heads, H)


def _reference(x, pe, wq, wk, gumbel, n_heads, attn_size, tau):
    """Pure-JAX mirror of the torch forward (same gumbel noise)."""
    B, S, H = x.shape
    pos = x + pe[None]
    Q = pos @ wq
    K = pos @ wk
    Q = Q.reshape(B, S, n_heads, attn_size).transpose(0, 2, 1, 3)
    K = K.reshape(B, S, n_heads, attn_size).transpose(0, 2, 1, 3)
    attn = jnp.einsum('bnsh,bnth->bnst', Q, K) / math.sqrt(H)
    attn = jnp.sum(attn, axis=-1) / S                 # (B, N, S)
    z = (attn + gumbel) / tau
    alphas = jax.nn.one_hot(jnp.argmax(z, axis=-1), S, dtype=x.dtype)
    return jnp.einsum('bns,bsh->bnh', alphas, x)


if __name__ == "__main__":
    B, S, H = 2, 8, 32          # batch, sequence_length, hidden_size
    A, N = 16, 2                # attention_size, N heads
    TAU = 1.0

    key = jax.random.PRNGKey(0)
    kx, kq, kk, kg = jax.random.split(key, 4)

    x = jax.random.normal(kx, (B, S, H), dtype=jnp.float32)

    # nn.Linear(hidden, A*N, bias=False) default init: U(-1/sqrt(H), 1/sqrt(H)),
    # stored here already transposed to (H, A*N).
    bound = 1.0 / math.sqrt(H)
    wq = jax.random.uniform(kq, (H, A * N), minval=-bound, maxval=bound,
                            dtype=jnp.float32)
    wk = jax.random.uniform(kk, (H, A * N), minval=-bound, maxval=bound,
                            dtype=jnp.float32)

    # Gumbel(0,1) noise (torch's gumbel_softmax samples its own internally;
    # here it is sampled deterministically from PRNGKey(0)).
    gumbel = jax.random.gumbel(kg, (B, N, S), dtype=jnp.float32)

    # PositionalEncoding buffer (max_len=100), interleaved sin/cos, sliced to S.
    position = jnp.arange(100, dtype=jnp.float32)[:, None]
    div_term = jnp.exp(jnp.arange(0, H, 2, dtype=jnp.float32)
                       * (-math.log(10000.0) / H))
    pe_full = jnp.stack([jnp.sin(position * div_term),
                         jnp.cos(position * div_term)], axis=-1).reshape(100, H)
    pe = pe_full[:S]

    # matmul_dtype=jnp.bfloat16 is recommended for throughput on v6e/v7x; the
    # demo keeps f32 so the hard-argmax selection matches the f32 reference.
    out = hard_attention_layer(x, pe, wq, wk, gumbel,
                               n_heads=N, attn_size=A, tau=TAU,
                               matmul_dtype=jnp.float32)
    out = jax.block_until_ready(out)

    ref = _reference(x, pe, wq, wk, gumbel, N, A, TAU)
    assert out.shape == (B, N, H)
    assert jnp.allclose(out, ref, atol=1e-5), "Pallas kernel mismatch vs reference"

    print("KERNEL_OK")
</pallas_src>

<mosaic_0001>
module attributes {stable_mosaic.version = 11 : i64} {
  func.func @_hard_attention_kernel(%arg0: i32, %arg1: memref<1x8x32xf32, #tpu.memory_space<vmem>>, %arg2: memref<8x32xf32, #tpu.memory_space<vmem>>, %arg3: memref<32x64xf32, #tpu.memory_space<vmem>>, %arg4: memref<1x2x8xf32, #tpu.memory_space<vmem>>, %arg5: memref<1x1x64xf32, #tpu.memory_space<vmem>>) attributes {dimension_semantics = [#tpu.dimension_semantics<parallel>], iteration_bounds = array<i64: 2>, scalar_prefetch = 0 : i64, scratch_operands = 0 : i64, tpu.core_type = #tpu.core_type<tc>, window_params = [{transform_indices = @transform_0, window_bounds = array<i64: 1, 8, 32>}, {pipeline_mode = #tpu.pipeline_mode<synchronous>, transform_indices = @transform_1, window_bounds = array<i64: 8, 32>}, {pipeline_mode = #tpu.pipeline_mode<synchronous>, transform_indices = @transform_2, window_bounds = array<i64: 32, 64>}, {transform_indices = @transform_3, window_bounds = array<i64: 1, 2, 8>}, {transform_indices = @transform_4, window_bounds = array<i64: 1, 1, 64>}]} {
    %c0 = arith.constant 0 : index
    %c0_0 = arith.constant 0 : index
    %c0_1 = arith.constant 0 : index
    %0 = vector.load %arg1[%c0, %c0_0, %c0_1] : memref<1x8x32xf32, #tpu.memory_space<vmem>>, vector<1x8x32xf32>
    %c0_2 = arith.constant 0 : index
    %c0_3 = arith.constant 0 : index
    %1 = vector.load %arg2[%c0_2, %c0_3] : memref<8x32xf32, #tpu.memory_space<vmem>>, vector<8x32xf32>
    %2 = vector.shape_cast %1 : vector<8x32xf32> to vector<1x8x32xf32>
    %3 = arith.addf %0, %2 : vector<1x8x32xf32>
    %4 = vector.shape_cast %3 : vector<1x8x32xf32> to vector<8x32xf32>
    %c0_4 = arith.constant 0 : index
    %c0_5 = arith.constant 0 : index
    %5 = vector.load %arg3[%c0_4, %c0_5] : memref<32x64xf32, #tpu.memory_space<vmem>>, vector<32x64xf32>
    %cst = arith.constant dense<0.000000e+00> : vector<8x64xf32>
    %6 = tpu.matmul %4, %5, %cst {dimension_numbers = #tpu.dot_dimension_numbers<[1], [0], [0], [1], [0, 0, 1, 1], [], []>} : vector<8x32xf32>, vector<32x64xf32>, vector<8x64xf32> -> vector<8x64xf32>
    %7 = vector.shape_cast %6 : vector<8x64xf32> to vector<1x8x64xf32>
    %8 = vector.extract_strided_slice %7 {offsets = [0, 0, 0], sizes = [1, 8, 32], strides = [1, 1, 1]} : vector<1x8x64xf32> to vector<1x8x32xf32>
    %9 = vector.extract_strided_slice %7 {offsets = [0, 0, 32], sizes = [1, 8, 32], strides = [1, 1, 1]} : vector<1x8x64xf32> to vector<1x8x32xf32>
    %cst_6 = arith.constant dense<0.000000e+00> : vector<1x32xf32>
    %10 = vector.multi_reduction <add>, %9, %cst_6 [1] : vector<1x8x32xf32> to vector<1x32xf32>
    %11 = vector.shape_cast %10 : vector<1x32xf32> to vector<1x1x32xf32>
    %12 = tpu.iota {dimensions = array<i32: 0>} : vector<2x32xi32>
    %13 = tpu.iota {dimensions = array<i32: 1>} : vector<2x32xi32>
    %c16_i32 = arith.constant 16 : i32
    %14 = vector.broadcast %c16_i32 : i32 to vector<2x32xi32>
    %15 = arith.muli %12, %14 : vector<2x32xi32>
    %16 = arith.cmpi sge, %13, %15 : vector<2x32xi32>
    %c16_i32_7 = arith.constant 16 : i32
    %17 = vector.broadcast %c16_i32_7 : i32 to vector<2x32xi32>
    %18 = arith.addi %15, %17 : vector<2x32xi32>
    %19 = arith.cmpi slt, %13, %18 : vector<2x32xi32>
    %20 = arith.andi %16, %19 : vector<2x32xi1>
    %21 = arith.extui %20 : vector<2x32xi1> to vector<2x32xi32>
    %22 = arith.sitofp %21 : vector<2x32xi32> to vector<2x32xf32>
    %23 = vector.shape_cast %22 : vector<2x32xf32> to vector<1x2x32xf32>
    %24 = vector.broadcast %11 : vector<1x1x32xf32> to vector<1x2x32xf32>
    %25 = arith.mulf %24, %23 : vector<1x2x32xf32>
    "tpu.trace_start"() <{level = 10 : i32, message = "bnk,bsk->bns"}> : () -> ()
    %cst_8 = arith.constant dense<0.000000e+00> : vector<1x2x8xf32>
    %26 = tpu.matmul %25, %8, %cst_8 {dimension_numbers = #tpu.dot_dimension_numbers<[2], [2], [1], [1], [0, 0, 0, 1, 1, 1], [0], [0]>} : vector<1x2x32xf32>, vector<1x8x32xf32>, vector<1x2x8xf32> -> vector<1x2x8xf32>
    "tpu.trace_stop"() : () -> ()
    %cst_9 = arith.constant 0.0220970865 : f32
    %27 = vector.broadcast %cst_9 : f32 to vector<1x2x8xf32>
    %28 = arith.mulf %26, %27 : vector<1x2x8xf32>
    %c0_10 = arith.constant 0 : index
    %c0_11 = arith.constant 0 : index
    %c0_12 = arith.constant 0 : index
    %29 = vector.load %arg4[%c0_10, %c0_11, %c0_12] : memref<1x2x8xf32, #tpu.memory_space<vmem>>, vector<1x2x8xf32>
    %30 = arith.addf %28, %29 : vector<1x2x8xf32>
    %cst_13 = arith.constant 1.000000e+00 : f32
    %31 = vector.broadcast %cst_13 : f32 to vector<1x2x8xf32>
    %32 = arith.divf %30, %31 : vector<1x2x8xf32>
    %33 = tpu.iota {dimensions = array<i32: 2>} : vector<1x2x8xi32>
    %cst_14 = arith.constant dense<0xFF800000> : vector<1x2xf32>
    %34 = vector.multi_reduction <maximumf>, %32, %cst_14 [2] : vector<1x2x8xf32> to vector<1x2xf32>
    %35 = vector.shape_cast %34 : vector<1x2xf32> to vector<1x2x1xf32>
    %36 = vector.broadcast %35 : vector<1x2x1xf32> to vector<1x2x8xf32>
    %37 = arith.cmpf oge, %32, %36 : vector<1x2x8xf32>
    %c8_i32 = arith.constant 8 : i32
    %38 = vector.broadcast %c8_i32 : i32 to vector<1x2x8xi32>
    %39 = arith.select %37, %33, %38 : vector<1x2x8xi1>, vector<1x2x8xi32>
    %cst_15 = arith.constant dense<2147483647> : vector<1x2xi32>
    %40 = vector.multi_reduction <minsi>, %39, %cst_15 [2] : vector<1x2x8xi32> to vector<1x2xi32>
    %41 = vector.shape_cast %40 : vector<1x2xi32> to vector<1x2x1xi32>
    %42 = vector.broadcast %41 : vector<1x2x1xi32> to vector<1x2x8xi32>
    %43 = arith.cmpi eq, %33, %42 : vector<1x2x8xi32>
    %44 = arith.extui %43 : vector<1x2x8xi1> to vector<1x2x8xi32>
    %45 = arith.sitofp %44 : vector<1x2x8xi32> to vector<1x2x8xf32>
    "tpu.trace_start"() <{level = 10 : i32, message = "bns,bsh->bnh"}> : () -> ()
    %cst_16 = arith.constant dense<0.000000e+00> : vector<1x2x32xf32>
    %46 = tpu.matmul %45, %0, %cst_16 {dimension_numbers = #tpu.dot_dimension_numbers<[2], [1], [1], [2], [0, 0, 0, 1, 1, 2], [0], [0]>} : vector<1x2x8xf32>, vector<1x8x32xf32>, vector<1x2x32xf32> -> vector<1x2x32xf32>
    "tpu.trace_stop"() : () -> ()
    %47 = vector.extract_strided_slice %46 {offsets = [0, 0, 0], sizes = [1, 1, 32], strides = [1, 1, 1]} : vector<1x2x32xf32> to vector<1x1x32xf32>
    %c0_17 = arith.constant 0 : index
    %c0_18 = arith.constant 0 : index
    %c0_19 = arith.constant 0 : index
    %48 = vector.load %arg5[%c0_17, %c0_18, %c0_19] : memref<1x1x64xf32, #tpu.memory_space<vmem>>, vector<1x1x32xf32>
    tpu.vector_store %arg5[%c0_17, %c0_18, %c0_19], %47 {strides = array<i32>} : memref<1x1x64xf32, #tpu.memory_space<vmem>>, vector<1x1x32xf32>,
    %49 = vector.extract_strided_slice %46 {offsets = [0, 1, 0], sizes = [1, 1, 32], strides = [1, 1, 1]} : vector<1x2x32xf32> to vector<1x1x32xf32>
    %c0_20 = arith.constant 0 : index
    %c0_21 = arith.constant 0 : index
    %c32 = arith.constant 32 : index
    %50 = vector.load %arg5[%c0_20, %c0_21, %c32] : memref<1x1x64xf32, #tpu.memory_space<vmem>>, vector<1x1x32xf32>
    tpu.vector_store %arg5[%c0_20, %c0_21, %c32], %49 {strides = array<i32>} : memref<1x1x64xf32, #tpu.memory_space<vmem>>, vector<1x1x32xf32>,
    return
  }
  func.func @transform_0(%arg0: i32) -> (i32, i32, i32) {
    %c0_i32 = arith.constant 0 : i32
    %c0_i32_0 = arith.constant 0 : i32
    %c0_i32_1 = arith.constant 0 : i32
    return %arg0, %c0_i32, %c0_i32_0 : i32, i32, i32
  }
  func.func @transform_1(%arg0: i32) -> (i32, i32) {
    %c0_i32 = arith.constant 0 : i32
    %c0_i32_0 = arith.constant 0 : i32
    %c0_i32_1 = arith.constant 0 : i32
    return %c0_i32, %c0_i32_0 : i32, i32
  }
  func.func @transform_2(%arg0: i32) -> (i32, i32) {
    %c0_i32 = arith.constant 0 : i32
    %c0_i32_0 = arith.constant 0 : i32
    %c0_i32_1 = arith.constant 0 : i32
    return %c0_i32, %c0_i32_0 : i32, i32
  }
  func.func @transform_3(%arg0: i32) -> (i32, i32, i32) {
    %c0_i32 = arith.constant 0 : i32
    %c0_i32_0 = arith.constant 0 : i32
    %c0_i32_1 = arith.constant 0 : i32
    return %arg0, %c0_i32, %c0_i32_0 : i32, i32, i32
  }
  func.func @transform_4(%arg0: i32) -> (i32, i32, i32) {
    %c0_i32 = arith.constant 0 : i32
    %c0_i32_0 = arith.constant 0 : i32
    %c0_i32_1 = arith.constant 0 : i32
    return %arg0, %c0_i32, %c0_i32_0 : i32, i32, i32
  }
}

</mosaic_0001>

<bundles_post_ra>
// kernel: tpu_custom_call.1
= control target key start
LH: loop header
LB: loop body
LE: loop exit
PB: predicated region body
PF: predicated region fallthrough
CT: control target
= control target key end

     0   :  { %s1060_s0 = inlined_call_operand.hbm [shape: f32[2,8,32], index: 0, kind: input, shape index: {}]   ;;  %s1061_s1 = inlined_call_operand.hbm [shape: f32[8,32], index: 1, kind: input, shape index: {}]   ;;  %s1062_s2 = inlined_call_operand.hbm [shape: f32[32,64], index: 2, kind: input, shape index: {}]   ;;  %s1063_s3 = inlined_call_operand.hbm [shape: f32[2,2,8], index: 3, kind: input, shape index: {}]   ;;  %s1064_s4 = inlined_call_operand.hbm [shape: f32[2,1,64], index: 4, kind: output, shape index: {}]  }
   0x1   :  { %1065 = sst [smem:[#allocation15_spill]] %s1061_s1 }
   0x2   :  { %1066 = sst [smem:[#allocation16_spill]] %s1062_s2 }
   0x3   :  { %9 = vsyncpa [#allocation3], 0 }
   0x4   :  { %11 = vsyncpa [#allocation3 + $0x1], 0 }
   0x5   :  { %12 = vsyncpa [#allocation6], 0 }
   0x6   :  { %13 = vsyncpa [#allocation9], 0 }
   0x7   :  { %15 = vsyncpa [#allocation9 + $0x1], 0 }
   0x8   :  { %16 = vsyncpa [#allocation4], 0 }
   0x9   :  { %18 = vsyncpa [#allocation4 + $0x1], 0  ;;  %s874_s15 = smov 0   ;;  %s876_s16 = smov 0  }
   0xa   :  { %s878_s17 = smov 0   ;;  %s880_s18 = smov 0  }
   0xb LB: > { %s895_s19 = sadd.s32 4294967295, %s840_s18   ;;  %s547_s20 = sadd.s32 4294967294, %s840_s18   ;;  %s840_s18 = sphi %s880_s18, %s1078_s18   ;;  %s836_s17 = sphi %s878_s17, %s1077_s17   ;;  %s832_s16 = sphi %s876_s16, %s1076_s16   ;;  %s828_s15 = sphi %s874_s15, %s1075_s15  }
   0xc   : > { %p44_p0 = scmp.ne.s32.totalorder %s832_s16, %s828_s15  ;;  %p45_p1 = scmp.eq.s32.totalorder %s895_s19, 0 }
   0xd   : > { %p136_p2 = scmp.eq.s32.totalorder %s895_s19, 1  ;;  %p142_p3 = scmp.eq.s32.totalorder %s547_s20, 1 }
   0xe   : > { %p904_p4 = por %p45_p1, %p44_p0  ;;  %p548_p5 = scmp.ge.s32.totalorder %s840_s18, 1 }
   0xf   : > { %p909_p6 = por %p142_p3, %p44_p0  ;;  %p149_p7 = scmp.lt.s32.totalorder %s840_s18, 3 }
  0x10   : > { %s1069_s1 = sld [smem:[#allocation15_spill]]  ;;  %s842_s27 = smov [#allocation5]  }
  0x11   : > { %p917_p8 = pnand %p548_p5, %p149_p7  ;;  %s163_s28 = sshll.u32 %s842_s27, 4  ;;  %s164_s28 = int_to_ptr.vmem [resolvable:$true] %s163_s28 }
  0x12   : > { %s1071_s2 = sld [smem:[#allocation16_spill]]  ;;  %s843_s6 = smov [#allocation7]  }
  0x13   : > { %p583_p10 = pneg %p917_p8  ;;  %s174_s7 = sshll.u32 %s843_s6, 4  ;;  %s175_s7 = int_to_ptr.vmem [resolvable:$true] %s174_s7 }
  0x14   : > { %s844_s8 = smov 128   ;;  %s845_s9 = smov 8  }
  0x15   : > { %p584_p11 = pnand %p583_p10, %p45_p1  ;;  %s930_s10 = sadd.s32 1, %s840_s18  }
  0x16   : > { %s161_s25 = sshll.u32 %s1069_s1, 4  ;;  %s28_s11 = ssub.s32 %s840_s18, %s930_s10  ;;  %s162_s25 = int_to_ptr.hbm [resolvable:$true] %s161_s25 }
  0x17   : > { %586 = dma.hbm_to_vmem [thread:$0]  (!%p584_p11), %s162_s25, 128, %s164_s28, [#allocation6]  }
  0x18   : > { %s172_s5 = sshll.u32 %s1071_s2, 4  ;;  %p29_p12 = scmp.eq.s32.totalorder %s28_s11, 0  ;;  %s173_s5 = int_to_ptr.hbm [resolvable:$true] %s172_s5 }
  0x19   : > { %589 = dma.hbm_to_vmem [thread:$0]  (!%p584_p11), %s173_s5, 512, %s175_s7, [#allocation6], %s844_s8, %s844_s8, %s845_s9  }
  0x1a   : > { %s31_s12 = sadd.s32 1, %s836_s17  ;;  %p38_p13 = scmp.ne.s32.totalorder %s836_s17, %s832_s16 }
  0x1b   : > { %p39_p0 = scmp.eq.s32.totalorder %s840_s18, 0  ;;  %p603_p7 = scmp.lt.s32.totalorder %s840_s18, 2 }
  0x1c   : > { %s939_s13 = scalar_select %p29_p12, %s836_s17, %s31_s12  }
  0x1d   : > { %p40_p3 = por %p39_p0, %p38_p13  ;;  %p943_p5 = por %p136_p2, %p38_p13 }
  0x1e   : > { %s949_s20 = sand.u32 1, %s836_s17   ;;  %s553_s24 = sshll.u32 %s840_s18, 3 }
  0x1f   : > { %s552_s23 = sshll.u32 %s949_s20, 3  ;;  %s196_s28 = scalar_lea.hbm %s1060_s0, %s553_s24 }
  0x20   : > { %s192_s29 = scalar_lea.vmem [#allocation2], %s552_s23  ;;  %s198_s5 = sshll.u32 %s196_s28, 4  ;;  %s199_s5 = int_to_ptr.hbm [resolvable:$true] %s198_s5 }
  0x21   : > { %s200_s30 = sshll.u32 %s192_s29, 4  ;;  %p956_p2 = pnand %p603_p7, %p40_p3  ;;  %s201_s30 = int_to_ptr.vmem [resolvable:$true] %s200_s30 }
  0x22   : > { %s554_s7 = sshll.u32 %s949_s20, 1  ;;  %s189_s8 = scalar_lea.sflag [#allocation3], %s949_s20 }
  0x23   : > { %s706_s9 = sshra.s32 %s199_s5, 4  ;;  %p710_p11 = pneg %p956_p2  ;;  %s707_s9 = int_to_ptr.hbm [resolvable:$true] %s706_s9 }
  0x24   : > { %s708_s11 = scalar_lea.hbm %s707_s9, 8  ;;  %s713_s24 = scalar_lea.hbm %s1060_s0, 16 }
  0x25   : > { %p709_p10 = scmp.ne.s32.totalorder %s707_s9, %s708_s11  ;;  %p714_p0 = scmp.lt.s32.totalorder %s707_s9, %s1060_s0 }
  0x26   : > { %p715_p3 = scmp.lt.s32.totalorder %s713_s24, %s708_s11 }
  0x27   : > { %p711_p12 = pnand %p710_p11, %p709_p10 }
  0x28   : > { %p716_p7 = por %p715_p3, %p714_p0 }
  0x29   : > { %p712_p13 = pneg %p711_p12 }
  0x2b   : > { %p717_p9 = pnand %p716_p7, %p712_p13 }
  0x2d   : > { %720 = shalt.err (!%p717_p9)
}
  0x2e   : > { %593 = dma.hbm_to_vmem [thread:$0]  (!%p956_p2), %s199_s5, 128, %s201_s30, %s189_s8  }
  0x2f   : > { %s555_s28 = sshll.u32 %s840_s18, 1  ;;  %s211_s29 = scalar_lea.vmem [#allocation8], %s554_s7 }
  0x30   : > { %s219_s1 = sshll.u32 %s211_s29, 4  ;;  %s215_s23 = scalar_lea.hbm %s1063_s3, %s555_s28  ;;  %s220_s1 = int_to_ptr.vmem [resolvable:$true] %s219_s1 }
  0x31   : > { %s217_s25 = sshll.u32 %s215_s23, 4  ;;  %s208_s9 = scalar_lea.sflag [#allocation9], %s949_s20  ;;  %s218_s25 = int_to_ptr.hbm [resolvable:$true] %s217_s25 }
  0x32   : > { %s736_s11 = sshra.s32 %s218_s25, 4  ;;  %s743_s7 = scalar_lea.hbm %s1063_s3, 4  ;;  %s737_s11 = int_to_ptr.hbm [resolvable:$true] %s736_s11 }
  0x33   : > { %s738_s24 = scalar_lea.hbm %s737_s11, 2  ;;  %p744_p13 = scmp.lt.s32.totalorder %s737_s11, %s1063_s3 }
  0x34   : > { %p739_p9 = scmp.ne.s32.totalorder %s737_s11, %s738_s24  ;;  %p745_p0 = scmp.lt.s32.totalorder %s743_s7, %s738_s24 }
  0x36   : > { %p741_p10 = pnand %p739_p9, %p710_p11  ;;  %p746_p3 = por %p745_p0, %p744_p13 }
  0x38   : > { %p742_p12 = pneg %p741_p10 }
  0x3a   : > { %p747_p7 = pnand %p746_p3, %p742_p12 }
  0x3c   : > { %750 = shalt.err (!%p747_p7)
}
  0x3d   : > { %596 = dma.hbm_to_vmem [thread:$0]  (!%p956_p2), %s218_s25, 32, %s220_s1, %s208_s9  }
  0x3e   : > { %228 = sbr.rel (%p917_p8) target bundleno = 1057 (0x421), region = 36  ;;  %s994_s2 = sand.u32 (!%p917_p8), 1, %s832_s16  }
  0x3f   : > { %s557_s20 = sshll.u32 (!%p917_p8), %s994_s2, 3  ;;  %s231_s28 = scalar_lea.sflag (!%p917_p8), [#allocation3], %s994_s2 }
  0x40   : > { %s234_s29 = scalar_lea.vmem (!%p917_p8), [#allocation2], %s557_s20 }
  0x43   : > { %811 = dma.done.wait (%p904_p4), %s231_s28, 128  }
  0x44   : > { %813 = vsyncadd (%p904_p4), %s231_s28, 4294967168 }
  0x45   : > { %815 = dma.done.wait (%p45_p1), [#allocation6], 640  }
  0x46   : > { %817 = vsyncadd (%p45_p1), [#allocation6], 4294966656  ;;  %s560_s1 = sshll.u32 %s994_s2, 1  ;;  %s251_s26 = scalar_lea.sflag [#allocation9], %s994_s2 }
  0x47   : > { %s1008_s6 = scalar_lea.vmem [#allocation8], %s560_s1 }
  0x48   : > { %819 = dma.done.wait (%p904_p4), %s251_s26, 32  }
  0x49   : > { %821 = vsyncadd (%p904_p4), %s251_s26, 4294967264  ;;  %v323_v0 = vlaneseq  ;;  %v290_v5 = vld [vmem:[#allocation7 + $0x18] sm:$0xff]  ;;  %v289_v6 = vld [vmem:[#allocation7 + $0x10] sm:$0xff]  ;;  %v846_v10 = vmov 0.0   ;;  %s847_s21 = smov 32   ;;  %vm291_vm3 = vcmask 261120   ;;  %s435_s11 = scalar_lea.hbm %s1064_s4, %s895_s19 }
  0x4a   : > { %307 = vmatpush.msra.mxu0 %v290_v5  ;;  %v284_v7 = vld [vmem:[%s234_s29] sm:$0xff]  ;;  %v285_v8 = vld [vmem:[#allocation5] sm:$0xff]  ;;  %v287_v12 = vld [vmem:[#allocation7] sm:$0xff]  ;;  %vm315_vm4 = vcmask 523520   ;;  %s848_s12 = smov 96   ;;  %vm370_vm5 = vcmask 58368  }
  0x4b   : > { %v324_v1 = vshrl.u32 %v323_v0, 7  ;;  %v1014_v2 = vand.u32 127, %v323_v0  ;;  %v288_v9 = vld [vmem:[#allocation7 + $0x8] sm:$0xff]  ;;  %413 = vmatpush.msra.mxu2 %v284_v7  ;;  %v286_v13 = vadd.f32 %v285_v8, %v284_v7  ;;  %v368_v26 = vld [vmem:[%s1008_s6] sm:$0x3]  ;;  %vm394_vm8 = vcmask 64512  }
  0x4c   : > { %308 = vmatpush.msra.mxu0 %v289_v6  ;;  %vm418_vm10 = vcmask 253952   ;;  %s283_s23 = scalar_lea.vmem [#allocation10], %s994_s2  ;;  %s439_s30 = sshll.u32 %s435_s11, 4  ;;  %vm424_vm11 = vcmask 517377   ;;  %s440_s30 = int_to_ptr.hbm [resolvable:$true] %s439_s30 }
  0x4d   : > { %v327_v3 = vmul.u32 16, %v324_v1  ;;  %s437_s24 = sshll.u32 %s283_s23, 4  ;;  %s427_s5 = scalar_lea.sflag [#allocation4], %s994_s2  ;;  %s438_s24 = int_to_ptr.vmem [resolvable:$true] %s437_s24 }
  0x4e   : > { %309 = vmatpush.msra.mxu0 %v288_v9  ;;  %s780_s7 = sshra.s32 %s440_s30, 4  ;;  %s786_s28 = scalar_lea.hbm %s1064_s4, 2  ;;  %s781_s7 = int_to_ptr.hbm [resolvable:$true] %s780_s7 }
  0x4f   : > { %vm328_vm0 = vcmp.ge.s32.totalorder %v1014_v2, %v327_v3  ;;  %v329_v4 = vadd.s32 16, %v327_v3  ;;  %s782_s8 = scalar_lea.hbm %s781_s7, 1  ;;  %p787_p2 = scmp.lt.s32.totalorder %s781_s7, %s1064_s4 }
  0x50   : > { %310 = vmatpush.msra.mxu0 %v287_v12  ;;  %p783_p1 = scmp.ne.s32.totalorder %s781_s7, %s782_s8  ;;  %p788_p11 = scmp.lt.s32.totalorder %s786_s28, %s782_s8 }
  0x51   : > { %vm330_vm1 = vcmp.lt.s32.totalorder %v1014_v2, %v329_v4  ;;  %561 = vmatmul.msk.f32.vlgmr.msra.gmra.mxu0 %vm291_vm3, %v286_v13 }
  0x52   : > { %vm331_vm2 = vmand %vm328_vm0, %vm330_vm1  ;;  %p784_p4 = pnand %p783_p1, %p943_p5  ;;  %p789_p9 = por %p788_p11, %p787_p2 }
  0x53   : > { %v562_v11 = vsel %vm331_vm2, 1.0, %v846_v10 }
  0x54   : > { %335 = vrot.lane.b32.xlu0 %v562_v11, %s847_s21  ;;  %p785_p8 = pneg %p784_p4 }
  0x56   : > { %p790_p10 = pnand %p789_p9, %p785_p8 }
  0xc6   : > { %v336_v21 = vpop.permute.xlu0 %335 }
  0xce   : > { %v312_v14 = vpop.f32.mrf.mxu0 }
  0xcf   : > { %v316_v15 = vsel %vm315_vm4, %v312_v14, 0.0  ;;  %563 = vmatpush.xpose.msk.msra.mxu1 %vm291_vm3, %v312_v14 }
  0xd0   : > { %v317_v16 = vrot.slane %v316_v15, 4 }
  0xd2   : > { %v318_v17 = vadd.f32 %v317_v16, %v316_v15 }
  0xd4   : > { %v319_v18 = vrot.slane %v318_v17, 2 }
  0xd6   : > { %v320_v19 = vadd.f32 %v319_v18, %v318_v17 }
  0xd8   : > { %v321_v20 = vrot.slane %v320_v19, 1 }
  0xda   : > { %v322_v22 = vadd.f32 %v321_v20, %v320_v19 }
  0xdc   : > { %v338_v23 = vmul.f32 %v336_v21, %v322_v22 }
  0xde   : > { %340 = vrot.lane.b32.xlu0 %v338_v23, %s848_s12 }
 0x150   : > { %v341_v24 = vpop.permute.xlu0 %340 }
 0x151   : > { %564 = vmatmul.msk.f32.vlgmr.msra.gmra.mxu1 %vm291_vm3, %v341_v24 }
 0x1ce   : > { %v364_v25 = vpop.f32.mrf.mxu1 }
 0x1cf   : > { %v367_v27 = vmul.f32 0.022097087, %v364_v25 }
 0x1d1   : > { %v369_v28 = vadd.f32 %v368_v26, %v367_v27 }
 0x1d3   : > { %v371_v29 = vsel %vm370_vm5, %v369_v28, -inf }
 0x1d4   : > { %372 = vmax.xlane.f32.xlu1 %v371_v29 }
 0x247   : > { %v373_v30 = vpop.xlane.xlu1 %372 }
 0x248   : > { %vm374_vm6 = vcmp.ge.f32.partialorder %v369_v28, %v373_v30 }
 0x249   : > { %v375_v31 = vsel %vm374_vm6, %v1014_v2, 8 }
 0x24a   : > { %v376_v32 = vsel %vm370_vm5, %v375_v31, 2147483647 }
 0x24b   : > { %v378_v33 = vshra.s32 %v376_v32, 16  ;;  %v377_v35 = vand.u32 65535, %v376_v32 }
 0x24d   : > { %v380_v34 = vcvt.s32.f32 %v378_v33  ;;  %v379_v37 = vcvt.s32.f32 %v377_v35 }
 0x24f   : > { %381 = vmin.xlane.f32.xlu1 %v380_v34 }
 0x2c2   : > { %v382_v36 = vpop.xlane.xlu1 %381 }
 0x2c3   : > { %vm383_vm7 = vcmp.eq.f32.partialorder %v380_v34, %v382_v36  ;;  %v388_v39 = vcvt.f32.s32 %v382_v36 }
 0x2c4   : > { %v384_v38 = vsel %vm383_vm7, %v379_v37, inf }
 0x2c5   : > { %385 = vmin.xlane.f32.xlu2 %v384_v38  ;;  %v389_v41 = vshll.u32 %v388_v39, 16 }
 0x338   : > { %v386_v40 = vpop.xlane.xlu2 %385 }
 0x339   : > { %v387_v42 = vcvt.f32.s32 %v386_v40 }
 0x33b   : > { %v390_v43 = vadd.s32 %v389_v41, %v387_v42 }
 0x33d   : > { %vm391_vm9 = vcmp.eq.s32.totalorder %v1014_v2, %v390_v43 }
 0x33e   : > { %v565_v44 = vsel %vm391_vm9, 1.0, %v846_v10 }
 0x33f   : > { %566 = vmatmul.msk.f32.vlgmr.msra.gmra.mxu2 %vm394_vm8, %v565_v44 }
 0x3c2   : > { %v415_v45 = vpop.f32.mrf.mxu2 }
 0x3c3   : > { %419 = vst.msk [vmem:[%s283_s23] sm:$0x1] %vm418_vm10, %v415_v45  ;;  %421 = vrot.lane.b32.xlu2 %v415_v45, %s847_s21 }
 0x41d   : > { %v422_v46 = vpop.permute.xlu2 %421 }
 0x41e   : > { %425 = vst.msk [vmem:[%s283_s23 - $0x1] sm:$0x2] %vm424_vm11, %v422_v46 }
 0x41f   : > { %793 = shalt.err (!%p790_p10)
}
 0x420   : > { %581 = dma.vmem_to_hbm [thread:$0]  (%p943_p5), %s438_s24, 16, %s440_s30, %s427_s5  }
 0x421 PF: > { %s451_s2 = sand.u32 1, %s828_s15   ;;  %p1074_p12 = scmp.ge.s32.totalorder %s840_s18, 2 }
 0x422   : > { %s452_s1 = scalar_lea.sflag [#allocation4], %s451_s2 }
 0x423   : > { %p598_p13 = pnand %p1074_p12, %p909_p6 }
 0x425   : > { %p599_p0 = pneg %p598_p13 }
 0x427   : > { %823 = dma.done.wait (%p599_p0), %s452_s1, 16  }
 0x428   : > { %825 = vsyncadd (%p599_p0), %s452_s1, 4294967280  ;;  %p21_p3 = scmp.ge.s32.totalorder %s930_s10, 4   ;;  %s1075_s15 = smov %s832_s16 }
 0x429   : > { %s1076_s16 = smov %s836_s17  ;;  %s1077_s17 = smov %s939_s13 }
 0x42a   : > { %s1078_s18 = smov %s930_s10  ;;  %23 = sbr.rel (!%p21_p3) target bundleno = 11 (0xb), region = 102 }
 0x42f   :  { %457 = vsyncpa [#allocation3], 1 }
 0x430   :  { %459 = vsyncpa [#allocation3 + $0x1], 1 }
 0x431   :  { %460 = vsyncpa [#allocation6], 1 }
 0x432   :  { %461 = vsyncpa [#allocation9], 1 }
 0x433   :  { %463 = vsyncpa [#allocation9 + $0x1], 1 }
 0x434   :  { %464 = vsyncpa [#allocation4], 1 }
 0x435   :  { %466 = vsyncpa [#allocation4 + $0x1], 1 }

</bundles_post_ra>
